<compile_context>
chip_gen: v5e
topology: v5e:2x2
jax: 0.10.0
libtpu: 0.0.40
codegen_flags: <defaults>
</compile_context>

<pallas_src>
import functools

import jax
import jax.numpy as jnp
from jax.experimental import pallas as pl
from jax.experimental.pallas import tpu as pltpu

HIDDEN = 128


def dqn_kernel(x_ref, w1_ref, w2_ref, w3_ref, w4_ref, b_ref, o_ref):
    """One batch tile: (TB, S) f32 -> (TB, A) f32 Q-values.

    Matmuls run on the MXU in bf16 with f32 accumulation; bias add + ReLU are
    done in f32. The x -> bf16 cast happens here (VALU slots have plenty of
    slack vs. the MXU, and it removes a wrapper-side XLA kernel).
    """
    b = b_ref[...]                       # (4, HIDDEN) f32, b4 zero-padded
    a = o_ref.shape[-1]                  # action_size (static)

    x = x_ref[...].astype(jnp.bfloat16)  # in-kernel cast for the MXU fast path
    h = jnp.dot(x, w1_ref[...], preferred_element_type=jnp.float32)
    h = jnp.maximum(h + b[0:1, :], 0.0)

    h = jnp.dot(h.astype(jnp.bfloat16), w2_ref[...],
                preferred_element_type=jnp.float32)
    h = jnp.maximum(h + b[1:2, :], 0.0)

    h = jnp.dot(h.astype(jnp.bfloat16), w3_ref[...],
                preferred_element_type=jnp.float32)
    h = jnp.maximum(h + b[2:3, :], 0.0)

    out = jnp.dot(h.astype(jnp.bfloat16), w4_ref[...],
                  preferred_element_type=jnp.float32)
    out = out + b[3:4, :a]               # no ReLU after fc4 (matches PyTorch)
    o_ref[...] = out.astype(o_ref.dtype)


def prepare_params(params, compute_dtype=jnp.bfloat16):
    """One-time conversion of PyTorch-layout params to kernel layout.

    Weights: (out, in) -> (in, out), cast to bf16 (MXU fast path).
    Biases:  packed into a single (4, HIDDEN) f32 array, b4 zero-padded.
    Do this at init / target-network-update time, NOT per forward call.
    """
    w1 = jnp.asarray(params["w1"])
    w2 = jnp.asarray(params["w2"])
    w3 = jnp.asarray(params["w3"])
    w4 = jnp.asarray(params["w4"])
    # Bias-packing / kernel layout assumptions (correctness guard).
    assert w1.shape[0] == HIDDEN, "fc1 must have 128 outputs"
    assert w2.shape == (HIDDEN, HIDDEN) and w3.shape == (HIDDEN, HIDDEN)
    assert w4.shape[1] == HIDDEN and w4.shape[0] <= HIDDEN, \
        "bias packing assumes action_size <= 128"

    prepped = {}
    for i, w in zip((1, 2, 3, 4), (w1, w2, w3, w4)):
        prepped[f"w{i}"] = w.T.astype(compute_dtype)
    bias = jnp.zeros((4, HIDDEN), jnp.float32)
    for i in (1, 2, 3, 4):
        bvec = jnp.asarray(params[f"b{i}"]).astype(jnp.float32)
        bias = bias.at[i - 1, : bvec.shape[0]].set(bvec)
    prepped["bias"] = bias
    return prepped


def _round_up(n, m):
    return (n + m - 1) // m * m


def _cdiv(a, b):
    return (a + b - 1) // b


def _infer_num_tensorcores():
    """Best-effort TensorCores-per-chip (2 on v7x, else 1). Safe fallback: 1."""
    try:
        kind = str(getattr(jax.devices()[0], "device_kind", "")).lower()
        if "7x" in kind:
            return 2
    except Exception:
        pass
    return 1


def _choose_batch_tile(batch, tile_batch, num_cores):
    """Rows per grid step.

    Large enough that a replay batch runs in one step per TensorCore (the
    ~0.35 us per-step overhead dominates a 128-wide MLP tile), never larger
    than the 8-aligned batch, and always a multiple of 8 (sublane constraint).
    On v7x (num_cores=2) the tile is split so the "parallel" batch axis gives
    both TensorCores one balanced step each.
    """
    pb8 = _round_up(batch, 8)
    tb = min(_round_up(tile_batch, 8), pb8)
    if num_cores > 1 and pb8 > 8 * num_cores:
        per_core = _round_up(_cdiv(pb8, num_cores), 8)
        tb = min(tb, per_core)
    return tb


def dqn_forward(x, prepped, *, tile_batch=1024, num_cores=None):
    """Forward pass. x: (batch, state_size) f32. Returns (batch, A) f32 Q-values."""
    batch, state_size = x.shape
    action_size = prepped["w4"].shape[1]
    if num_cores is None:
        num_cores = _infer_num_tensorcores()
    tb = _choose_batch_tile(batch, tile_batch, num_cores)
    grid = (_cdiv(batch, tb),)           # ragged last tile is masked by Pallas

    # Advisory cost hint so XLA schedules this tiny custom call sensibly.
    weight_bytes = sum(
        int(prepped[f"w{i}"].size) * prepped[f"w{i}"].dtype.itemsize
        for i in (1, 2, 3, 4)
    ) + int(prepped["bias"].size) * 4
    flops = 2 * batch * (state_size * HIDDEN + 2 * HIDDEN * HIDDEN
                         + HIDDEN * action_size)
    bytes_accessed = (batch * state_size * x.dtype.itemsize
                      + batch * action_size * 4 + weight_bytes)
    cost = pl.CostEstimate(flops=flops, transcendentals=0,
                           bytes_accessed=bytes_accessed)

    const = lambda i: (0, 0)             # weights / bias stay VMEM-resident
    return pl.pallas_call(
        dqn_kernel,
        out_shape=jax.ShapeDtypeStruct((batch, action_size), jnp.float32),
        grid=grid,
        in_specs=[
            pl.BlockSpec((tb, state_size), lambda i: (i, 0)),
            pl.BlockSpec((state_size, HIDDEN), const),
            pl.BlockSpec((HIDDEN, HIDDEN), const),
            pl.BlockSpec((HIDDEN, HIDDEN), const),
            pl.BlockSpec((HIDDEN, action_size), const),
            pl.BlockSpec((4, HIDDEN), const),
        ],
        out_specs=pl.BlockSpec((tb, action_size), lambda i: (i, 0)),
        compiler_params=pltpu.CompilerParams(
            dimension_semantics=("parallel",),    # both TensorCores on v7x
        ),
        cost_estimate=cost,
    )(x, prepped["w1"], prepped["w2"], prepped["w3"], prepped["w4"],
      prepped["bias"])


def init_params(key, state_size, action_size):
    """Deterministic PyTorch-style nn.Linear init: U(-1/sqrt(fan_in), ...)."""
    sizes = [(HIDDEN, state_size), (HIDDEN, HIDDEN), (HIDDEN, HIDDEN),
             (action_size, HIDDEN)]
    params = {}
    for i, (out_f, in_f) in enumerate(sizes, start=1):
        key, kw, kb = jax.random.split(key, 3)
        bound = 1.0 / (in_f ** 0.5)
        params[f"w{i}"] = jax.random.uniform(
            kw, (out_f, in_f), jnp.float32, minval=-bound, maxval=bound)
        params[f"b{i}"] = jax.random.uniform(
            kb, (out_f,), jnp.float32, minval=-bound, maxval=bound)
    return params


def ref_fwd_bf16(x, p):
    """Reference with the same bf16 rounding of matmul inputs, f32 accum."""
    def r(a):
        return a.astype(jnp.bfloat16).astype(jnp.float32)
    h = jnp.maximum(jnp.dot(r(x), r(p["w1"]).T) + p["b1"], 0.0)
    h = jnp.maximum(jnp.dot(r(h), r(p["w2"]).T) + p["b2"], 0.0)
    h = jnp.maximum(jnp.dot(r(h), r(p["w3"]).T) + p["b3"], 0.0)
    return jnp.dot(r(h), r(p["w4"]).T) + p["b4"]


if __name__ == "__main__":
    key = jax.random.PRNGKey(0)
    key, kx = jax.random.split(key)

    state_size, action_size = 16, 4
    params = init_params(key, state_size, action_size)
    prepped = prepare_params(params)     # one-time layout/dtype conversion

    # Replay-style small batch: one grid step, no wrapper cast/pad/slice.
    batch = 8
    x = jax.random.normal(kx, (batch, state_size), jnp.float32)
    out = jax.jit(dqn_forward)(x, prepped)
    jax.block_until_ready(out)
    assert out.shape == (batch, action_size)
    assert jnp.allclose(out, ref_fwd_bf16(x, params), atol=1e-2, rtol=1e-2)

    # Multi-step grid + in-kernel ragged last tile (40 rows, tile 16 -> 3 steps).
    key, kx2 = jax.random.split(key)
    x2 = jax.random.normal(kx2, (40, state_size), jnp.float32)
    out2 = jax.jit(functools.partial(dqn_forward, tile_batch=16))(x2, prepped)
    jax.block_until_ready(out2)
    assert out2.shape == (40, action_size)
    assert jnp.allclose(out2, ref_fwd_bf16(x2, params), atol=1e-2, rtol=1e-2)

    # Tiny action-selection batch: single dispatch, masked tail handled in-kernel.
    key, kx3 = jax.random.split(key)
    x3 = jax.random.normal(kx3, (4, state_size), jnp.float32)
    out3 = jax.jit(dqn_forward)(x3, prepped)
    jax.block_until_ready(out3)
    assert out3.shape == (4, action_size)
    assert jnp.allclose(out3, ref_fwd_bf16(x3, params), atol=1e-2, rtol=1e-2)

    # v7x-style split: force num_cores=2 so the batch runs as 2 parallel steps.
    key, kx4 = jax.random.split(key)
    x4 = jax.random.normal(kx4, (64, state_size), jnp.float32)
    out4 = jax.jit(functools.partial(dqn_forward, num_cores=2))(x4, prepped)
    jax.block_until_ready(out4)
    assert out4.shape == (64, action_size)
    assert jnp.allclose(out4, ref_fwd_bf16(x4, params), atol=1e-2, rtol=1e-2)

    print("KERNEL_OK")
</pallas_src>

<mosaic_0001>
module attributes {stable_mosaic.version = 11 : i64} {
  func.func @dqn_kernel(%arg0: i32, %arg1: memref<8x16xf32, #tpu.memory_space<vmem>>, %arg2: memref<16x128xbf16, #tpu.memory_space<vmem>>, %arg3: memref<128x128xbf16, #tpu.memory_space<vmem>>, %arg4: memref<128x128xbf16, #tpu.memory_space<vmem>>, %arg5: memref<128x4xbf16, #tpu.memory_space<vmem>>, %arg6: memref<4x128xf32, #tpu.memory_space<vmem>>, %arg7: memref<8x4xf32, #tpu.memory_space<vmem>>) attributes {dimension_semantics = [#tpu.dimension_semantics<parallel>], iteration_bounds = array<i64: 1>, scalar_prefetch = 0 : i64, scratch_operands = 0 : i64, tpu.core_type = #tpu.core_type<tc>, window_params = [{transform_indices = @transform_0, window_bounds = array<i64: 8, 16>}, {pipeline_mode = #tpu.pipeline_mode<synchronous>, transform_indices = @transform_1, window_bounds = array<i64: 16, 128>}, {pipeline_mode = #tpu.pipeline_mode<synchronous>, transform_indices = @transform_2, window_bounds = array<i64: 128, 128>}, {pipeline_mode = #tpu.pipeline_mode<synchronous>, transform_indices = @transform_3, window_bounds = array<i64: 128, 128>}, {pipeline_mode = #tpu.pipeline_mode<synchronous>, transform_indices = @transform_4, window_bounds = array<i64: 128, 4>}, {pipeline_mode = #tpu.pipeline_mode<synchronous>, transform_indices = @transform_5, window_bounds = array<i64: 4, 128>}, {transform_indices = @transform_6, window_bounds = array<i64: 8, 4>}]} {
    %c0 = arith.constant 0 : index
    %c0_0 = arith.constant 0 : index
    %0 = vector.load %arg6[%c0, %c0_0] : memref<4x128xf32, #tpu.memory_space<vmem>>, vector<4x128xf32>
    %c0_1 = arith.constant 0 : index
    %c0_2 = arith.constant 0 : index
    %1 = vector.load %arg1[%c0_1, %c0_2] : memref<8x16xf32, #tpu.memory_space<vmem>>, vector<8x16xf32>
    %2 = arith.truncf %1 : vector<8x16xf32> to vector<8x16xbf16>
    %c0_3 = arith.constant 0 : index
    %c0_4 = arith.constant 0 : index
    %3 = vector.load %arg2[%c0_3, %c0_4] : memref<16x128xbf16, #tpu.memory_space<vmem>>, vector<16x128xbf16>
    %cst = arith.constant dense<0.000000e+00> : vector<8x128xf32>
    %4 = tpu.matmul %2, %3, %cst {dimension_numbers = #tpu.dot_dimension_numbers<[1], [0], [0], [1], [0, 0, 1, 1], [], []>} : vector<8x16xbf16>, vector<16x128xbf16>, vector<8x128xf32> -> vector<8x128xf32>
    %5 = vector.extract_strided_slice %0 {offsets = [0, 0], sizes = [1, 128], strides = [1, 1]} : vector<4x128xf32> to vector<1x128xf32>
    %6 = vector.broadcast %5 : vector<1x128xf32> to vector<8x128xf32>
    %7 = arith.addf %4, %6 : vector<8x128xf32>
    %cst_5 = arith.constant 0.000000e+00 : f32
    %8 = vector.broadcast %cst_5 : f32 to vector<8x128xf32>
    %9 = arith.maximumf %7, %8 : vector<8x128xf32>
    %10 = arith.truncf %9 : vector<8x128xf32> to vector<8x128xbf16>
    %c0_6 = arith.constant 0 : index
    %c0_7 = arith.constant 0 : index
    %11 = vector.load %arg3[%c0_6, %c0_7] : memref<128x128xbf16, #tpu.memory_space<vmem>>, vector<128x128xbf16>
    %cst_8 = arith.constant dense<0.000000e+00> : vector<8x128xf32>
    %12 = tpu.matmul %10, %11, %cst_8 {dimension_numbers = #tpu.dot_dimension_numbers<[1], [0], [0], [1], [0, 0, 1, 1], [], []>} : vector<8x128xbf16>, vector<128x128xbf16>, vector<8x128xf32> -> vector<8x128xf32>
    %13 = vector.extract_strided_slice %0 {offsets = [1, 0], sizes = [1, 128], strides = [1, 1]} : vector<4x128xf32> to vector<1x128xf32>
    %14 = vector.broadcast %13 : vector<1x128xf32> to vector<8x128xf32>
    %15 = arith.addf %12, %14 : vector<8x128xf32>
    %cst_9 = arith.constant 0.000000e+00 : f32
    %16 = vector.broadcast %cst_9 : f32 to vector<8x128xf32>
    %17 = arith.maximumf %15, %16 : vector<8x128xf32>
    %18 = arith.truncf %17 : vector<8x128xf32> to vector<8x128xbf16>
    %c0_10 = arith.constant 0 : index
    %c0_11 = arith.constant 0 : index
    %19 = vector.load %arg4[%c0_10, %c0_11] : memref<128x128xbf16, #tpu.memory_space<vmem>>, vector<128x128xbf16>
    %cst_12 = arith.constant dense<0.000000e+00> : vector<8x128xf32>
    %20 = tpu.matmul %18, %19, %cst_12 {dimension_numbers = #tpu.dot_dimension_numbers<[1], [0], [0], [1], [0, 0, 1, 1], [], []>} : vector<8x128xbf16>, vector<128x128xbf16>, vector<8x128xf32> -> vector<8x128xf32>
    %21 = vector.extract_strided_slice %0 {offsets = [2, 0], sizes = [1, 128], strides = [1, 1]} : vector<4x128xf32> to vector<1x128xf32>
    %22 = vector.broadcast %21 : vector<1x128xf32> to vector<8x128xf32>
    %23 = arith.addf %20, %22 : vector<8x128xf32>
    %cst_13 = arith.constant 0.000000e+00 : f32
    %24 = vector.broadcast %cst_13 : f32 to vector<8x128xf32>
    %25 = arith.maximumf %23, %24 : vector<8x128xf32>
    %26 = arith.truncf %25 : vector<8x128xf32> to vector<8x128xbf16>
    %c0_14 = arith.constant 0 : index
    %c0_15 = arith.constant 0 : index
    %27 = vector.load %arg5[%c0_14, %c0_15] : memref<128x4xbf16, #tpu.memory_space<vmem>>, vector<128x4xbf16>
    %cst_16 = arith.constant dense<0.000000e+00> : vector<8x4xf32>
    %28 = tpu.matmul %26, %27, %cst_16 {dimension_numbers = #tpu.dot_dimension_numbers<[1], [0], [0], [1], [0, 0, 1, 1], [], []>} : vector<8x128xbf16>, vector<128x4xbf16>, vector<8x4xf32> -> vector<8x4xf32>
    %29 = vector.extract_strided_slice %0 {offsets = [3, 0], sizes = [1, 4], strides = [1, 1]} : vector<4x128xf32> to vector<1x4xf32>
    %30 = vector.broadcast %29 : vector<1x4xf32> to vector<8x4xf32>
    %31 = arith.addf %28, %30 : vector<8x4xf32>
    %c0_17 = arith.constant 0 : index
    %c0_18 = arith.constant 0 : index
    %32 = vector.load %arg7[%c0_17, %c0_18] : memref<8x4xf32, #tpu.memory_space<vmem>>, vector<8x4xf32>
    tpu.vector_store %arg7[%c0_17, %c0_18], %31 {strides = array<i32>} : memref<8x4xf32, #tpu.memory_space<vmem>>, vector<8x4xf32>,
    return
  }
  func.func @transform_0(%arg0: i32) -> (i32, i32) {
    %c0_i32 = arith.constant 0 : i32
    %c0_i32_0 = arith.constant 0 : i32
    return %arg0, %c0_i32 : i32, i32
  }
  func.func @transform_1(%arg0: i32) -> (i32, i32) {
    %c0_i32 = arith.constant 0 : i32
    %c0_i32_0 = arith.constant 0 : i32
    %c0_i32_1 = arith.constant 0 : i32
    return %c0_i32, %c0_i32_0 : i32, i32
  }
  func.func @transform_2(%arg0: i32) -> (i32, i32) {
    %c0_i32 = arith.constant 0 : i32
    %c0_i32_0 = arith.constant 0 : i32
    %c0_i32_1 = arith.constant 0 : i32
    return %c0_i32, %c0_i32_0 : i32, i32
  }
  func.func @transform_3(%arg0: i32) -> (i32, i32) {
    %c0_i32 = arith.constant 0 : i32
    %c0_i32_0 = arith.constant 0 : i32
    %c0_i32_1 = arith.constant 0 : i32
    return %c0_i32, %c0_i32_0 : i32, i32
  }
  func.func @transform_4(%arg0: i32) -> (i32, i32) {
    %c0_i32 = arith.constant 0 : i32
    %c0_i32_0 = arith.constant 0 : i32
    %c0_i32_1 = arith.constant 0 : i32
    return %c0_i32, %c0_i32_0 : i32, i32
  }
  func.func @transform_5(%arg0: i32) -> (i32, i32) {
    %c0_i32 = arith.constant 0 : i32
    %c0_i32_0 = arith.constant 0 : i32
    %c0_i32_1 = arith.constant 0 : i32
    return %c0_i32, %c0_i32_0 : i32, i32
  }
  func.func @transform_6(%arg0: i32) -> (i32, i32) {
    %c0_i32 = arith.constant 0 : i32
    %c0_i32_0 = arith.constant 0 : i32
    return %arg0, %c0_i32 : i32, i32
  }
}

</mosaic_0001>

<bundles_post_ra>
// kernel: dqn_forward.1
= control target key start
LH: loop header
LB: loop body
LE: loop exit
PB: predicated region body
PF: predicated region fallthrough
CT: control target
= control target key end

     0   :  { %11 = vsyncpa [#allocation3], 0  ;;  %s656_s0 = inlined_call_operand.hbm [shape: f32[8,16], index: 0, kind: input, shape index: {}]   ;;  %s657_s1 = inlined_call_operand.hbm [shape: bf16[16,128], index: 1, kind: input, shape index: {}]   ;;  %s658_s2 = inlined_call_operand.vmem [shape: bf16[128,128], index: 2, kind: input, shape index: {}]   ;;  %s659_s3 = inlined_call_operand.hbm [shape: bf16[128,128], index: 3, kind: input, shape index: {}]   ;;  %s660_s4 = inlined_call_operand.vmem [shape: bf16[128,4], index: 4, kind: input, shape index: {}]   ;;  %s661_s5 = inlined_call_operand.vmem [shape: f32[4,128], index: 5, kind: input, shape index: {}]   ;;  %s662_s6 = inlined_call_operand.vmem [shape: f32[8,4], index: 6, kind: output, shape index: {}]  }
   0x1   :  { %12 = vsyncpa [#allocation5], 0  ;;  %s28_s23 = sshll.u32 %s657_s1, 4  ;;  %s553_s24 = smov [#allocation4]   ;;  %s29_s23 = int_to_ptr.hbm [resolvable:$true] %s28_s23 }
   0x2   :  { %s30_s25 = sshll.u32 %s553_s24, 4  ;;  %s18_s28 = sshll.u32 %s656_s0, 4  ;;  %s31_s25 = int_to_ptr.vmem [resolvable:$true] %s30_s25  ;;  %s19_s28 = int_to_ptr.hbm [resolvable:$true] %s18_s28 }
   0x3   :  { %s554_s29 = smov 64   ;;  %s555_s30 = smov 4  }
   0x4   :  { %36 = dma.hbm_to_vmem [thread:$0]  %s29_s23, 128, %s31_s25, [#allocation5], %s554_s29, %s554_s29, %s555_s30  }
   0x5   :  { %s556_s7 = smov [#allocation2]   ;;  %s43_s11 = sshll.u32 %s659_s3, 4  ;;  %s44_s11 = int_to_ptr.hbm [resolvable:$true] %s43_s11 }
   0x6   :  { %s20_s8 = sshll.u32 %s556_s7, 4  ;;  %s557_s1 = smov [#allocation6]   ;;  %s21_s8 = int_to_ptr.vmem [resolvable:$true] %s20_s8 }
   0x7   :  { %23 = dma.hbm_to_vmem [thread:$0]  %s19_s28, 128, %s21_s8, [#allocation3]  }
   0x8   :  { %s45_s12 = sshll.u32 %s557_s1, 4  ;;  %s46_s12 = int_to_ptr.vmem [resolvable:$true] %s45_s12 }
   0x9   :  { %51 = dma.hbm_to_vmem [thread:$0]  %s44_s11, 1024, %s46_s12, [#allocation5], %s554_s29, %s554_s29, %s555_s30  }
   0xa   :  { %549 = dma.done.wait [#allocation3], 128  }
   0xb   :  { %550 = vsyncadd [#allocation3], 4294967168 }
   0xc   :  { %551 = dma.done.wait [#allocation5], 1152  }
   0xd   :  { %552 = vsyncadd [#allocation5], 4294966144  ;;  %v447_v0 = vld [vmem:[#allocation4] sm:$0xff]  ;;  %v70_v1 = vld [vmem:[#allocation2] sm:$0xff]  ;;  %vm81_vm0 = vcmask 130048   ;;  %vm338_vm1 = vcmask 31744  }
   0xe   :  { %v455_v2 = vld [vmem:[%s658_s2 + $0x38] sm:$0xff]  ;;  %v71_v3 = vpack.c.bf16 %v70_v1, %v70_v1  ;;  %92 = vmatpush.bf16.msra.mxu0 %v447_v0  ;;  %v454_v4 = vld [vmem:[%s658_s2 + $0x30] sm:$0xff]  ;;  %v453_v5 = vld [vmem:[%s658_s2 + $0x28] sm:$0xff] }
   0xf   :  { %165 = vmatpush.bf16.msra.mxu1 %v455_v2  ;;  %v452_v6 = vld [vmem:[%s658_s2 + $0x20] sm:$0xff]  ;;  %v451_v7 = vld [vmem:[%s658_s2 + $0x18] sm:$0xff]  ;;  %v450_v8 = vld [vmem:[%s658_s2 + $0x10] sm:$0xff] }
  0x10   :  { %v449_v9 = vld [vmem:[%s658_s2 + $0x8] sm:$0xff]  ;;  %v448_v10 = vld [vmem:[%s658_s2] sm:$0xff]  ;;  %v461_v13 = vld [vmem:[#allocation6 + $0x28] sm:$0xff] }
  0x11   :  { %350 = vmatmul.msk.bf16.vlgmr.msra.gmra.mxu0 %vm81_vm0, %v71_v3  ;;  %v463_v11 = vld [vmem:[#allocation6 + $0x38] sm:$0xff]  ;;  %v462_v12 = vld [vmem:[#allocation6 + $0x30] sm:$0xff]  ;;  %v460_v14 = vld [vmem:[#allocation6 + $0x20] sm:$0xff] }
  0x12   :  { %245 = vmatpush.bf16.msra.mxu2 %v463_v11  ;;  %v459_v15 = vld [vmem:[#allocation6 + $0x18] sm:$0xff]  ;;  %v69_v16 = vld [vmem:[%s661_s5] sm:$0xf]  ;;  %v457_v24 = vld [vmem:[#allocation6 + $0x8] sm:$0xff] }
  0x13   :  { %166 = vmatpush.bf16.msra.mxu1 %v454_v4  ;;  %v458_v17 = vld [vmem:[#allocation6 + $0x10] sm:$0xff]  ;;  %v74_v18 = vperm.slane %v69_v16, 0  ;;  %v456_v25 = vld [vmem:[#allocation6] sm:$0xff]  ;;  %v471_v26 = vld [vmem:[%s660_s4 + $0x38] sm:$0xff]  ;;  %v116_v32 = vperm.slane %v69_v16, 1  ;;  %v196_v40 = vperm.slane %v69_v16, 2 }
  0x14   :  { %325 = vmatpush.bf16.msra.mxu3 %v471_v26  ;;  %v470_v27 = vld [vmem:[%s660_s4 + $0x30] sm:$0xff]  ;;  %v469_v28 = vld [vmem:[%s660_s4 + $0x28] sm:$0xff]  ;;  %v468_v29 = vld [vmem:[%s660_s4 + $0x20] sm:$0xff]  ;;  %v276_v46 = vperm.slane %v69_v16, 3 }
  0x15   :  { %v467_v30 = vld [vmem:[%s660_s4 + $0x18] sm:$0xff]  ;;  %v466_v31 = vld [vmem:[%s660_s4 + $0x10] sm:$0xff]  ;;  %v465_v38 = vld [vmem:[%s660_s4 + $0x8] sm:$0xff] }
  0x16   :  { %246 = vmatpush.bf16.msra.mxu2 %v462_v12  ;;  %v464_v39 = vld [vmem:[%s660_s4] sm:$0xff] }
  0x17   :  { %167 = vmatpush.bf16.msra.mxu1 %v453_v5 }
  0x18   :  { %326 = vmatpush.bf16.msra.mxu3 %v470_v27 }
  0x1a   :  { %247 = vmatpush.bf16.msra.mxu2 %v461_v13 }
  0x1b   :  { %168 = vmatpush.bf16.msra.mxu1 %v452_v6 }
  0x1c   :  { %327 = vmatpush.bf16.msra.mxu3 %v469_v28 }
  0x1e   :  { %248 = vmatpush.bf16.msra.mxu2 %v460_v14 }
  0x1f   :  { %169 = vmatpush.bf16.msra.mxu1 %v451_v7 }
  0x20   :  { %328 = vmatpush.bf16.msra.mxu3 %v468_v29 }
  0x22   :  { %249 = vmatpush.bf16.msra.mxu2 %v459_v15 }
  0x23   :  { %170 = vmatpush.bf16.msra.mxu1 %v450_v8 }
  0x24   :  { %329 = vmatpush.bf16.msra.mxu3 %v467_v30 }
  0x26   :  { %250 = vmatpush.bf16.msra.mxu2 %v458_v17 }
  0x27   :  { %171 = vmatpush.bf16.msra.mxu1 %v449_v9 }
  0x28   :  { %330 = vmatpush.bf16.msra.mxu3 %v466_v31 }
  0x2a   :  { %251 = vmatpush.bf16.msra.mxu2 %v457_v24 }
  0x2b   :  { %172 = vmatpush.bf16.msra.mxu1 %v448_v10 }
  0x2c   :  { %331 = vmatpush.bf16.msra.mxu3 %v465_v38 }
  0x2e   :  { %252 = vmatpush.bf16.msra.mxu2 %v456_v25 }
  0x30   :  { %332 = vmatpush.bf16.msra.mxu3 %v464_v39 }
  0x8e   :  { %v94_v19 = vpop.f32.mrf.mxu0 }
  0x8f   :  { %v95_v20 = vadd.f32 %v94_v19, %v74_v18 }
  0x91   :  { %v98_v21 = vmax.f32 %v95_v20, 0.0 }
  0x93   :  { %v99_v22 = vpack.c.bf16 %v98_v21, %v98_v21 }
  0x95   :  { %173 = vmatmul.bf16.vlgmr.msra.gmra.mxu1 %v99_v22 }
  0x96   :  { %v96_v23 = vpop.f32.mrf.mxu0 }
 0x112   :  { %v174_v33 = vpop.f32.mrf.mxu1 }
 0x113   :  { %v175_v34 = vadd.f32 %v174_v33, %v116_v32 }
 0x115   :  { %v178_v35 = vmax.f32 %v175_v34, 0.0 }
 0x117   :  { %v179_v36 = vpack.c.bf16 %v178_v35, %v178_v35 }
 0x119   :  { %253 = vmatmul.bf16.vlgmr.msra.gmra.mxu2 %v179_v36 }
 0x11a   :  { %v176_v37 = vpop.f32.mrf.mxu1 }
 0x19c   :  { %v254_v41 = vpop.f32.mrf.mxu2 }
 0x19d   :  { %v255_v42 = vadd.f32 %v254_v41, %v196_v40 }
 0x19f   :  { %v258_v43 = vmax.f32 %v255_v42, 0.0 }
 0x1a1   :  { %v259_v44 = vpack.c.bf16 %v258_v43, %v258_v43 }
 0x1a3   :  { %333 = vmatmul.bf16.vlgmr.msra.gmra.mxu3 %v259_v44 }
 0x1a4   :  { %v256_v45 = vpop.f32.mrf.mxu2 }
 0x226   :  { %v334_v47 = vpop.f32.mrf.mxu3 }
 0x227   :  { %v335_v48 = vadd.f32 %v334_v47, %v276_v46 }
 0x229   :  { %339 = vst.msk [vmem:[%s662_s6] sm:$0xff] %vm338_vm1, %v335_v48 }
 0x22e   :  { %v336_v49 = vpop.f32.mrf.mxu3 }
 0x22f   :  { %344 = vsyncpa [#allocation3], 1 }
 0x230   :  { %345 = vsyncpa [#allocation5], 1 }

</bundles_post_ra>
